<compile_context>
chip_gen: v7x
topology: tpu7x:2x2x1
jax: 0.10.0
libtpu: 0.0.40
codegen_flags: <defaults>
</compile_context>

<pallas_src>
import jax
import jax.numpy as jnp
from jax.experimental import pallas as pl
from jax.experimental.pallas import tpu as pltpu


def _round_up(x, m):
    return ((x + m - 1) // m) * m


def _make_kernel(*, tc, n_cols, mask_cols, scale_post_matmul):
    """Build the K_GCN kernel body (static config baked in via closure)."""

    def kernel(s_ref, x_ref, w1_ref, b1_ref, w2_ref, b2_ref, o_ref, deg_ref):
        k = pl.program_id(1)

        # ---- degree accumulation over S column tiles --------------------
        @pl.when(k == 0)
        def _():
            deg_ref[...] = jnp.zeros_like(deg_ref)

        s = s_ref[...]
        if mask_cols:
            # Last column tile may read past N: zero the out-of-bounds columns
            # so they do not corrupt the row sums of valid rows.
            col = k * tc + jax.lax.broadcasted_iota(jnp.int32, s.shape, 1)
            s = jnp.where(col < n_cols, s, jnp.zeros_like(s))
        deg_ref[...] += jnp.sum(s, axis=1, keepdims=True, dtype=jnp.float32)

        # ---- matmuls + store only on the last column step ---------------
        @pl.when(k == pl.num_programs(1) - 1)
        def _():
            # rowsum(S + I) == rowsum(S) + 1
            d = jax.lax.rsqrt(deg_ref[...] + 1.0)                    # [TM, 1]

            if scale_post_matmul:
                # bf16 path: feed x/h to the MXU in their storage dtype and
                # apply diag(d) to the f32 accumulator (mathematically equal).
                h = jnp.dot(x_ref[...].astype(w1_ref.dtype), w1_ref[...],
                            preferred_element_type=jnp.float32)
                h = jnp.maximum(h * d + b1_ref[...], 0.0)            # [TM, H_pad]
                y = jnp.dot(h.astype(w2_ref.dtype), w2_ref[...],
                            preferred_element_type=jnp.float32)
                o_ref[...] = (y * d + b2_ref[...]).astype(o_ref.dtype)
            else:
                # f32 path: mirror the reference ordering (scale rows first).
                x = x_ref[...].astype(jnp.float32) * d               # [TM, F_pad]
                h = jnp.dot(x, w1_ref[...], preferred_element_type=jnp.float32)
                h = jnp.maximum(h + b1_ref[...], 0.0)                # [TM, H_pad]
                h = h * d
                y = jnp.dot(h, w2_ref[...], preferred_element_type=jnp.float32)
                o_ref[...] = (y + b2_ref[...]).astype(o_ref.dtype)

    return kernel


def _pick_tiles(n, f_pad, h_pad, s_item, x_item, w_item):
    """Generation-aware (TM, TC, vmem_limit_bytes) selection."""
    try:
        info = pltpu.get_tpu_info()
        vmem_cap = int(getattr(info, "vmem_capacity_bytes", 64 * 1024 * 1024))
    except Exception:
        vmem_cap = 64 * 1024 * 1024  # conservative: v7x per-TC VMEM
    vmem_limit = int(vmem_cap * 0.8)     # explicit scoped-VMEM request w/ headroom
    budget = int(vmem_cap * 0.70)        # working budget (temps / compiler scratch)

    # Small graphs: a single (N, N) block, grid = (1, 1).
    if n <= 512:
        return n, n, vmem_limit

    # Resident (single-buffered) weights + biases.
    budget -= (f_pad * h_pad + h_pad * h_pad) * w_item + 2 * h_pad * 4

    tc = 512  # S column tile: ~85% of HBM roofline per measured streaming data
    per_row = (2 * tc * s_item          # S slab (double-buffered)
               + 2 * f_pad * x_item     # feature slab (double-buffered)
               + 2 * h_pad * 4          # output slab (double-buffered)
               + 2 * h_pad * 4          # f32 h / y temporaries
               + 4)                     # degree accumulator
    tm = budget // max(per_row, 1)
    # Align M to the MXU tile: multiple of 256 when possible, never below 128.
    tm = (tm // 256) * 256 if tm >= 256 else (tm // 128) * 128
    tm = int(max(128, min(tm, 1024)))
    tm = min(tm, _round_up(n, 256))
    return tm, tc, vmem_limit


def k_gcn_forward(node_feature, S, w1, b1, w2, b2, *,
                  matmul_dtype=None, tile_m=None, tile_n=None):
    """node_feature: [N, F], S: [N, N], w1: [H, F], b1: [H], w2: [H, H], b2: [H].

    matmul_dtype=jnp.bfloat16 enables MXU-native bf16 operands (f32 accumulation).
    S may be supplied in bf16 to halve the dominant N^2 HBM stream.
    """
    N, F = node_feature.shape
    H = w1.shape[0]

    # Lane-dense padding of feature / hidden dims (wrapper-side plumbing only).
    F_pad = _round_up(F, 128)
    H_pad = _round_up(H, 128)

    w_dtype = jnp.float32 if matmul_dtype is None else matmul_dtype

    x_p = node_feature
    if F_pad != F:
        x_p = jnp.pad(node_feature, ((0, 0), (0, F_pad - F)))

    # nn.Linear stores weight as [out, in]: pre-transpose to [in, out], zero-pad.
    w1_t = jnp.pad(jnp.transpose(w1), ((0, F_pad - F), (0, H_pad - H))).astype(w_dtype)
    w2_t = jnp.pad(jnp.transpose(w2), ((0, H_pad - H), (0, H_pad - H))).astype(w_dtype)
    b1_r = jnp.pad(b1, (0, H_pad - H)).reshape(1, H_pad).astype(jnp.float32)
    b2_r = jnp.pad(b2, (0, H_pad - H)).reshape(1, H_pad).astype(jnp.float32)

    s_item = jnp.dtype(S.dtype).itemsize
    x_item = jnp.dtype(x_p.dtype).itemsize
    w_item = jnp.dtype(w_dtype).itemsize

    tm, tc, vmem_limit = _pick_tiles(N, F_pad, H_pad, s_item, x_item, w_item)
    if tile_m is not None:
        tm = int(tile_m)
    if tile_n is not None:
        tc = int(tile_n)

    grid = (pl.cdiv(N, tm), pl.cdiv(N, tc))
    mask_cols = (N % tc) != 0
    kernel = _make_kernel(tc=tc, n_cols=N, mask_cols=mask_cols,
                          scale_post_matmul=matmul_dtype is not None)

    cost = pl.CostEstimate(
        flops=int(2 * N * (F_pad * H_pad + H_pad * H_pad)),
        transcendentals=int(N),
        bytes_accessed=int(N * N * s_item + N * F_pad * x_item
                           + (F_pad * H_pad + H_pad * H_pad) * w_item
                           + N * H_pad * 4),
    )

    def call(single_buffer_weights):
        def resident(shape):
            # Constant block index -> VMEM-resident across the whole grid.
            if single_buffer_weights:
                return pl.BlockSpec(shape, lambda i, k: (0, 0),
                                    pipeline_mode=pl.Buffered(1))
            return pl.BlockSpec(shape, lambda i, k: (0, 0))

        return pl.pallas_call(
            kernel,
            out_shape=jax.ShapeDtypeStruct((N, H_pad), jnp.float32),
            grid=grid,
            in_specs=[
                pl.BlockSpec((tm, tc), lambda i, k: (i, k)),      # S streams
                pl.BlockSpec((tm, F_pad), lambda i, k: (i, 0)),   # node features
                resident((F_pad, H_pad)),                         # W1^T
                resident((1, H_pad)),                             # b1
                resident((H_pad, H_pad)),                         # W2^T
                resident((1, H_pad)),                             # b2
            ],
            out_specs=pl.BlockSpec((tm, H_pad), lambda i, k: (i, 0)),
            scratch_shapes=[pltpu.VMEM((tm, 1), jnp.float32)],    # degree accum
            compiler_params=pltpu.CompilerParams(
                dimension_semantics=("parallel", "arbitrary"),
                vmem_limit_bytes=vmem_limit),
            cost_estimate=cost,
        )(S, x_p, w1_t, b1_r, w2_t, b2_r)

    try:
        out_pad = call(single_buffer_weights=True)
    except Exception:
        # Older JAX without pipeline_mode / Buffered(1): default double-buffering.
        out_pad = call(single_buffer_weights=False)

    return out_pad[:, :H] if H_pad != H else out_pad


def k_gcn_reference(node_feature, S, w1, b1, w2, b2):
    """Pure-JAX reference mirroring the PyTorch module."""
    N = node_feature.shape[0]
    Sp = S.astype(jnp.float32) + jnp.eye(N, dtype=jnp.float32)
    d = jnp.sum(Sp, axis=1) ** (-0.5)
    norm = jnp.diag(d)
    out = jnp.matmul(norm, node_feature.astype(jnp.float32)) @ w1.T + b1
    out = jnp.maximum(out, 0.0)
    out = jnp.matmul(norm, out)
    return out @ w2.T + b2


if __name__ == "__main__":
    key = jax.random.PRNGKey(0)
    k_x, k_s, k_w1, k_b1, k_w2, k_b2 = jax.random.split(key, 6)

    N, F, H = 8, 16, 32   # num_nodes, f_dim, hidden_dim

    node_feature = jax.random.normal(k_x, (N, F), dtype=jnp.float32)
    # symmetric non-negative adjacency-like matrix (no self loops; module adds I)
    A = jax.random.uniform(k_s, (N, N), dtype=jnp.float32)
    S = (A + A.T) * 0.5
    S = S * (1.0 - jnp.eye(N, dtype=jnp.float32))

    # deterministic parameter init (Linear: weight [out, in], bias [out])
    w1 = jax.random.normal(k_w1, (H, F), dtype=jnp.float32) * 0.1
    b1 = jax.random.normal(k_b1, (H,), dtype=jnp.float32) * 0.1
    w2 = jax.random.normal(k_w2, (H, H), dtype=jnp.float32) * 0.1
    b2 = jax.random.normal(k_b2, (H,), dtype=jnp.float32) * 0.1

    ref = k_gcn_reference(node_feature, S, w1, b1, w2, b2)

    # 1) default f32 path, single-block grid
    out = jax.block_until_ready(k_gcn_forward(node_feature, S, w1, b1, w2, b2))
    assert out.shape == (N, H), f"bad output shape {out.shape}"
    assert jnp.allclose(out, ref, atol=1e-4, rtol=1e-4), "f32 path mismatch"

    # 2) multi-tile path: small tiles exercise the 2-D grid, the degree
    #    accumulator and ragged row/column masking (N2 not a multiple of 128).
    N2 = 200
    k_x2, k_s2 = jax.random.split(jax.random.PRNGKey(1), 2)
    x2 = jax.random.normal(k_x2, (N2, F), dtype=jnp.float32)
    A2 = jax.random.uniform(k_s2, (N2, N2), dtype=jnp.float32)
    S2 = (A2 + A2.T) * 0.5
    S2 = S2 * (1.0 - jnp.eye(N2, dtype=jnp.float32))
    ref2 = k_gcn_reference(x2, S2, w1, b1, w2, b2)
    out2 = jax.block_until_ready(
        k_gcn_forward(x2, S2, w1, b1, w2, b2, tile_m=128, tile_n=128))
    assert jnp.allclose(out2, ref2, atol=1e-4, rtol=1e-4), "tiled path mismatch"

    # 3) bf16 MXU-native matmul path (looser tolerance due to bf16 rounding).
    out_bf16 = jax.block_until_ready(
        k_gcn_forward(node_feature, S, w1, b1, w2, b2, matmul_dtype=jnp.bfloat16))
    assert jnp.allclose(out_bf16, ref, atol=5e-2, rtol=5e-2), "bf16 path mismatch"

    print("KERNEL_OK")
</pallas_src>

<mosaic_0001>
module attributes {stable_mosaic.version = 11 : i64} {
  func.func @kernel(%arg0: i32, %arg1: i32, %arg2: memref<8x8xf32, #tpu.memory_space<vmem>>, %arg3: memref<8x128xf32, #tpu.memory_space<vmem>>, %arg4: memref<128x128xf32, #tpu.memory_space<vmem>>, %arg5: memref<1x128xf32, #tpu.memory_space<vmem>>, %arg6: memref<128x128xf32, #tpu.memory_space<vmem>>, %arg7: memref<1x128xf32, #tpu.memory_space<vmem>>, %arg8: memref<8x128xf32, #tpu.memory_space<vmem>>, %arg9: memref<8x1xf32, #tpu.memory_space<vmem>>) attributes {dimension_semantics = [#tpu.dimension_semantics<parallel>, #tpu.dimension_semantics<arbitrary>], iteration_bounds = array<i64: 1, 1>, scalar_prefetch = 0 : i64, scratch_operands = 1 : i64, tpu.core_type = #tpu.core_type<tc>, window_params = [{transform_indices = @transform_0, window_bounds = array<i64: 8, 8>}, {transform_indices = @transform_1, window_bounds = array<i64: 8, 128>}, {pipeline_mode = #tpu.pipeline_mode<synchronous>, transform_indices = @transform_2, window_bounds = array<i64: 128, 128>}, {pipeline_mode = #tpu.pipeline_mode<synchronous>, transform_indices = @transform_3, window_bounds = array<i64: 1, 128>}, {pipeline_mode = #tpu.pipeline_mode<synchronous>, transform_indices = @transform_4, window_bounds = array<i64: 128, 128>}, {pipeline_mode = #tpu.pipeline_mode<synchronous>, transform_indices = @transform_5, window_bounds = array<i64: 1, 128>}, {transform_indices = @transform_6, window_bounds = array<i64: 8, 128>}]} {
    %c0_i32 = arith.constant 0 : i32
    %0 = arith.cmpi eq, %arg1, %c0_i32 : i32
    %1 = arith.extui %0 : i1 to i32
    %c0_i32_0 = arith.constant 0 : i32
    %2 = arith.cmpi ne, %1, %c0_i32_0 : i32
    scf.if %2 {
      %cst_8 = arith.constant 0.000000e+00 : f32
      %12 = vector.broadcast %cst_8 : f32 to vector<8x1xf32>
      %c0_9 = arith.constant 0 : index
      %c0_10 = arith.constant 0 : index
      %13 = vector.load %arg9[%c0_9, %c0_10] : memref<8x1xf32, #tpu.memory_space<vmem>>, vector<8x1xf32>
      tpu.vector_store %arg9[%c0_9, %c0_10], %12 {strides = array<i32>} : memref<8x1xf32, #tpu.memory_space<vmem>>, vector<8x1xf32>,
    } else {
    }
    %c0 = arith.constant 0 : index
    %c0_1 = arith.constant 0 : index
    %3 = vector.load %arg2[%c0, %c0_1] : memref<8x8xf32, #tpu.memory_space<vmem>>, vector<8x8xf32>
    %c0_2 = arith.constant 0 : index
    %c0_3 = arith.constant 0 : index
    %4 = vector.load %arg9[%c0_2, %c0_3] : memref<8x1xf32, #tpu.memory_space<vmem>>, vector<8x1xf32>
    %cst = arith.constant dense<0.000000e+00> : vector<8xf32>
    %5 = vector.multi_reduction <add>, %3, %cst [1] : vector<8x8xf32> to vector<8xf32>
    %6 = vector.shape_cast %5 : vector<8xf32> to vector<8x1xf32>
    %7 = arith.addf %4, %6 : vector<8x1xf32>
    %c0_4 = arith.constant 0 : index
    %c0_5 = arith.constant 0 : index
    %8 = vector.load %arg9[%c0_4, %c0_5] : memref<8x1xf32, #tpu.memory_space<vmem>>, vector<8x1xf32>
    tpu.vector_store %arg9[%c0_4, %c0_5], %7 {strides = array<i32>} : memref<8x1xf32, #tpu.memory_space<vmem>>, vector<8x1xf32>,
    %c0_i32_6 = arith.constant 0 : i32
    %9 = arith.cmpi eq, %arg1, %c0_i32_6 : i32
    %10 = arith.extui %9 : i1 to i32
    %c0_i32_7 = arith.constant 0 : i32
    %11 = arith.cmpi ne, %10, %c0_i32_7 : i32
    scf.if %11 {
      %c0_8 = arith.constant 0 : index
      %c0_9 = arith.constant 0 : index
      %12 = vector.load %arg9[%c0_8, %c0_9] : memref<8x1xf32, #tpu.memory_space<vmem>>, vector<8x1xf32>
      %cst_10 = arith.constant 1.000000e+00 : f32
      %13 = vector.broadcast %cst_10 : f32 to vector<8x1xf32>
      %14 = arith.addf %12, %13 : vector<8x1xf32>
      %15 = math.rsqrt %14 : vector<8x1xf32>
      %c0_11 = arith.constant 0 : index
      %c0_12 = arith.constant 0 : index
      %16 = vector.load %arg3[%c0_11, %c0_12] : memref<8x128xf32, #tpu.memory_space<vmem>>, vector<8x128xf32>
      %17 = vector.broadcast %15 : vector<8x1xf32> to vector<8x128xf32>
      %18 = arith.mulf %16, %17 : vector<8x128xf32>
      %c0_13 = arith.constant 0 : index
      %c0_14 = arith.constant 0 : index
      %19 = vector.load %arg4[%c0_13, %c0_14] : memref<128x128xf32, #tpu.memory_space<vmem>>, vector<128x128xf32>
      %cst_15 = arith.constant dense<0.000000e+00> : vector<8x128xf32>
      %20 = tpu.matmul %18, %19, %cst_15 {dimension_numbers = #tpu.dot_dimension_numbers<[1], [0], [0], [1], [0, 0, 1, 1], [], []>} : vector<8x128xf32>, vector<128x128xf32>, vector<8x128xf32> -> vector<8x128xf32>
      %c0_16 = arith.constant 0 : index
      %c0_17 = arith.constant 0 : index
      %21 = vector.load %arg5[%c0_16, %c0_17] : memref<1x128xf32, #tpu.memory_space<vmem>>, vector<1x128xf32>
      %22 = vector.broadcast %21 : vector<1x128xf32> to vector<8x128xf32>
      %23 = arith.addf %20, %22 : vector<8x128xf32>
      %cst_18 = arith.constant 0.000000e+00 : f32
      %24 = vector.broadcast %cst_18 : f32 to vector<8x128xf32>
      %25 = arith.maximumf %23, %24 : vector<8x128xf32>
      %26 = vector.broadcast %15 : vector<8x1xf32> to vector<8x128xf32>
      %27 = arith.mulf %25, %26 : vector<8x128xf32>
      %c0_19 = arith.constant 0 : index
      %c0_20 = arith.constant 0 : index
      %28 = vector.load %arg6[%c0_19, %c0_20] : memref<128x128xf32, #tpu.memory_space<vmem>>, vector<128x128xf32>
      %cst_21 = arith.constant dense<0.000000e+00> : vector<8x128xf32>
      %29 = tpu.matmul %27, %28, %cst_21 {dimension_numbers = #tpu.dot_dimension_numbers<[1], [0], [0], [1], [0, 0, 1, 1], [], []>} : vector<8x128xf32>, vector<128x128xf32>, vector<8x128xf32> -> vector<8x128xf32>
      %c0_22 = arith.constant 0 : index
      %c0_23 = arith.constant 0 : index
      %30 = vector.load %arg7[%c0_22, %c0_23] : memref<1x128xf32, #tpu.memory_space<vmem>>, vector<1x128xf32>
      %31 = vector.broadcast %30 : vector<1x128xf32> to vector<8x128xf32>
      %32 = arith.addf %29, %31 : vector<8x128xf32>
      %c0_24 = arith.constant 0 : index
      %c0_25 = arith.constant 0 : index
      %33 = vector.load %arg8[%c0_24, %c0_25] : memref<8x128xf32, #tpu.memory_space<vmem>>, vector<8x128xf32>
      tpu.vector_store %arg8[%c0_24, %c0_25], %32 {strides = array<i32>} : memref<8x128xf32, #tpu.memory_space<vmem>>, vector<8x128xf32>,
    } else {
    }
    return
  }
  func.func @transform_0(%arg0: i32, %arg1: i32) -> (i32, i32) {
    %c0_i32 = arith.constant 0 : i32
    return %arg0, %arg1 : i32, i32
  }
  func.func @transform_1(%arg0: i32, %arg1: i32) -> (i32, i32) {
    %c0_i32 = arith.constant 0 : i32
    %c0_i32_0 = arith.constant 0 : i32
    return %arg0, %c0_i32 : i32, i32
  }
  func.func @transform_2(%arg0: i32, %arg1: i32) -> (i32, i32) {
    %c0_i32 = arith.constant 0 : i32
    %c0_i32_0 = arith.constant 0 : i32
    %c0_i32_1 = arith.constant 0 : i32
    return %c0_i32, %c0_i32_0 : i32, i32
  }
  func.func @transform_3(%arg0: i32, %arg1: i32) -> (i32, i32) {
    %c0_i32 = arith.constant 0 : i32
    %c0_i32_0 = arith.constant 0 : i32
    %c0_i32_1 = arith.constant 0 : i32
    return %c0_i32, %c0_i32_0 : i32, i32
  }
  func.func @transform_4(%arg0: i32, %arg1: i32) -> (i32, i32) {
    %c0_i32 = arith.constant 0 : i32
    %c0_i32_0 = arith.constant 0 : i32
    %c0_i32_1 = arith.constant 0 : i32
    return %c0_i32, %c0_i32_0 : i32, i32
  }
  func.func @transform_5(%arg0: i32, %arg1: i32) -> (i32, i32) {
    %c0_i32 = arith.constant 0 : i32
    %c0_i32_0 = arith.constant 0 : i32
    %c0_i32_1 = arith.constant 0 : i32
    return %c0_i32, %c0_i32_0 : i32, i32
  }
  func.func @transform_6(%arg0: i32, %arg1: i32) -> (i32, i32) {
    %c0_i32 = arith.constant 0 : i32
    %c0_i32_0 = arith.constant 0 : i32
    return %arg0, %c0_i32 : i32, i32
  }
}

module attributes {stable_mosaic.version = 11 : i64} {
  func.func @kernel(%arg0: i32, %arg1: i32, %arg2: memref<8x8xf32, #tpu.memory_space<vmem>>, %arg3: memref<8x128xf32, #tpu.memory_space<vmem>>, %arg4: memref<128x128xf32, #tpu.memory_space<vmem>>, %arg5: memref<1x128xf32, #tpu.memory_space<vmem>>, %arg6: memref<128x128xf32, #tpu.memory_space<vmem>>, %arg7: memref<1x128xf32, #tpu.memory_space<vmem>>, %arg8: memref<8x128xf32, #tpu.memory_space<vmem>>, %arg9: memref<8x1xf32, #tpu.memory_space<vmem>>) attributes {dimension_semantics = [#tpu.dimension_semantics<parallel>, #tpu.dimension_semantics<arbitrary>], iteration_bounds = array<i64: 1, 1>, scalar_prefetch = 0 : i64, scratch_operands = 1 : i64, tpu.core_type = #tpu.core_type<tc>, window_params = [{transform_indices = @transform_0, window_bounds = array<i64: 8, 8>}, {transform_indices = @transform_1, window_bounds = array<i64: 8, 128>}, {pipeline_mode = #tpu.pipeline_mode<synchronous>, transform_indices = @transform_2, window_bounds = array<i64: 128, 128>}, {pipeline_mode = #tpu.pipeline_mode<synchronous>, transform_indices = @transform_3, window_bounds = array<i64: 1, 128>}, {pipeline_mode = #tpu.pipeline_mode<synchronous>, transform_indices = @transform_4, window_bounds = array<i64: 128, 128>}, {pipeline_mode = #tpu.pipeline_mode<synchronous>, transform_indices = @transform_5, window_bounds = array<i64: 1, 128>}, {transform_indices = @transform_6, window_bounds = array<i64: 8, 128>}]} {
    %c0_i32 = arith.constant 0 : i32
    %0 = arith.cmpi eq, %arg1, %c0_i32 : i32
    %1 = arith.extui %0 : i1 to i32
    %c0_i32_0 = arith.constant 0 : i32
    %2 = arith.cmpi ne, %1, %c0_i32_0 : i32
    scf.if %2 {
      %cst_8 = arith.constant 0.000000e+00 : f32
      %12 = vector.broadcast %cst_8 : f32 to vector<8x1xf32>
      %c0_9 = arith.constant 0 : index
      %c0_10 = arith.constant 0 : index
      %13 = vector.load %arg9[%c0_9, %c0_10] : memref<8x1xf32, #tpu.memory_space<vmem>>, vector<8x1xf32>
      tpu.vector_store %arg9[%c0_9, %c0_10], %12 {strides = array<i32>} : memref<8x1xf32, #tpu.memory_space<vmem>>, vector<8x1xf32>,
    } else {
    }
    %c0 = arith.constant 0 : index
    %c0_1 = arith.constant 0 : index
    %3 = vector.load %arg2[%c0, %c0_1] : memref<8x8xf32, #tpu.memory_space<vmem>>, vector<8x8xf32>
    %c0_2 = arith.constant 0 : index
    %c0_3 = arith.constant 0 : index
    %4 = vector.load %arg9[%c0_2, %c0_3] : memref<8x1xf32, #tpu.memory_space<vmem>>, vector<8x1xf32>
    %cst = arith.constant dense<0.000000e+00> : vector<8xf32>
    %5 = vector.multi_reduction <add>, %3, %cst [1] : vector<8x8xf32> to vector<8xf32>
    %6 = vector.shape_cast %5 : vector<8xf32> to vector<8x1xf32>
    %7 = arith.addf %4, %6 : vector<8x1xf32>
    %c0_4 = arith.constant 0 : index
    %c0_5 = arith.constant 0 : index
    %8 = vector.load %arg9[%c0_4, %c0_5] : memref<8x1xf32, #tpu.memory_space<vmem>>, vector<8x1xf32>
    tpu.vector_store %arg9[%c0_4, %c0_5], %7 {strides = array<i32>} : memref<8x1xf32, #tpu.memory_space<vmem>>, vector<8x1xf32>,
    %c0_i32_6 = arith.constant 0 : i32
    %9 = arith.cmpi eq, %arg1, %c0_i32_6 : i32
    %10 = arith.extui %9 : i1 to i32
    %c0_i32_7 = arith.constant 0 : i32
    %11 = arith.cmpi ne, %10, %c0_i32_7 : i32
    scf.if %11 {
      %c0_8 = arith.constant 0 : index
      %c0_9 = arith.constant 0 : index
      %12 = vector.load %arg9[%c0_8, %c0_9] : memref<8x1xf32, #tpu.memory_space<vmem>>, vector<8x1xf32>
      %cst_10 = arith.constant 1.000000e+00 : f32
      %13 = vector.broadcast %cst_10 : f32 to vector<8x1xf32>
      %14 = arith.addf %12, %13 : vector<8x1xf32>
      %15 = math.rsqrt %14 : vector<8x1xf32>
      %c0_11 = arith.constant 0 : index
      %c0_12 = arith.constant 0 : index
      %16 = vector.load %arg3[%c0_11, %c0_12] : memref<8x128xf32, #tpu.memory_space<vmem>>, vector<8x128xf32>
      %17 = vector.broadcast %15 : vector<8x1xf32> to vector<8x128xf32>
      %18 = arith.mulf %16, %17 : vector<8x128xf32>
      %c0_13 = arith.constant 0 : index
      %c0_14 = arith.constant 0 : index
      %19 = vector.load %arg4[%c0_13, %c0_14] : memref<128x128xf32, #tpu.memory_space<vmem>>, vector<128x128xf32>
      %cst_15 = arith.constant dense<0.000000e+00> : vector<8x128xf32>
      %20 = tpu.matmul %18, %19, %cst_15 {dimension_numbers = #tpu.dot_dimension_numbers<[1], [0], [0], [1], [0, 0, 1, 1], [], []>} : vector<8x128xf32>, vector<128x128xf32>, vector<8x128xf32> -> vector<8x128xf32>
      %c0_16 = arith.constant 0 : index
      %c0_17 = arith.constant 0 : index
      %21 = vector.load %arg5[%c0_16, %c0_17] : memref<1x128xf32, #tpu.memory_space<vmem>>, vector<1x128xf32>
      %22 = vector.broadcast %21 : vector<1x128xf32> to vector<8x128xf32>
      %23 = arith.addf %20, %22 : vector<8x128xf32>
      %cst_18 = arith.constant 0.000000e+00 : f32
      %24 = vector.broadcast %cst_18 : f32 to vector<8x128xf32>
      %25 = arith.maximumf %23, %24 : vector<8x128xf32>
      %26 = vector.broadcast %15 : vector<8x1xf32> to vector<8x128xf32>
      %27 = arith.mulf %25, %26 : vector<8x128xf32>
      %c0_19 = arith.constant 0 : index
      %c0_20 = arith.constant 0 : index
      %28 = vector.load %arg6[%c0_19, %c0_20] : memref<128x128xf32, #tpu.memory_space<vmem>>, vector<128x128xf32>
      %cst_21 = arith.constant dense<0.000000e+00> : vector<8x128xf32>
      %29 = tpu.matmul %27, %28, %cst_21 {dimension_numbers = #tpu.dot_dimension_numbers<[1], [0], [0], [1], [0, 0, 1, 1], [], []>} : vector<8x128xf32>, vector<128x128xf32>, vector<8x128xf32> -> vector<8x128xf32>
      %c0_22 = arith.constant 0 : index
      %c0_23 = arith.constant 0 : index
      %30 = vector.load %arg7[%c0_22, %c0_23] : memref<1x128xf32, #tpu.memory_space<vmem>>, vector<1x128xf32>
      %31 = vector.broadcast %30 : vector<1x128xf32> to vector<8x128xf32>
      %32 = arith.addf %29, %31 : vector<8x128xf32>
      %c0_24 = arith.constant 0 : index
      %c0_25 = arith.constant 0 : index
      %33 = vector.load %arg8[%c0_24, %c0_25] : memref<8x128xf32, #tpu.memory_space<vmem>>, vector<8x128xf32>
      tpu.vector_store %arg8[%c0_24, %c0_25], %32 {strides = array<i32>} : memref<8x128xf32, #tpu.memory_space<vmem>>, vector<8x128xf32>,
    } else {
    }
    return
  }
  func.func @transform_0(%arg0: i32, %arg1: i32) -> (i32, i32) {
    %c0_i32 = arith.constant 0 : i32
    return %arg0, %arg1 : i32, i32
  }
  func.func @transform_1(%arg0: i32, %arg1: i32) -> (i32, i32) {
    %c0_i32 = arith.constant 0 : i32
    %c0_i32_0 = arith.constant 0 : i32
    return %arg0, %c0_i32 : i32, i32
  }
  func.func @transform_2(%arg0: i32, %arg1: i32) -> (i32, i32) {
    %c0_i32 = arith.constant 0 : i32
    %c0_i32_0 = arith.constant 0 : i32
    %c0_i32_1 = arith.constant 0 : i32
    return %c0_i32, %c0_i32_0 : i32, i32
  }
  func.func @transform_3(%arg0: i32, %arg1: i32) -> (i32, i32) {
    %c0_i32 = arith.constant 0 : i32
    %c0_i32_0 = arith.constant 0 : i32
    %c0_i32_1 = arith.constant 0 : i32
    return %c0_i32, %c0_i32_0 : i32, i32
  }
  func.func @transform_4(%arg0: i32, %arg1: i32) -> (i32, i32) {
    %c0_i32 = arith.constant 0 : i32
    %c0_i32_0 = arith.constant 0 : i32
    %c0_i32_1 = arith.constant 0 : i32
    return %c0_i32, %c0_i32_0 : i32, i32
  }
  func.func @transform_5(%arg0: i32, %arg1: i32) -> (i32, i32) {
    %c0_i32 = arith.constant 0 : i32
    %c0_i32_0 = arith.constant 0 : i32
    %c0_i32_1 = arith.constant 0 : i32
    return %c0_i32, %c0_i32_0 : i32, i32
  }
  func.func @transform_6(%arg0: i32, %arg1: i32) -> (i32, i32) {
    %c0_i32 = arith.constant 0 : i32
    %c0_i32_0 = arith.constant 0 : i32
    return %arg0, %c0_i32 : i32, i32
  }
}

</mosaic_0001>

<bundles_post_ra>
// kernel: tpu_custom_call.1
= control target key start
LH: loop header
LB: loop body
LE: loop exit
PB: predicated region body
PF: predicated region fallthrough
CT: control target
= control target key end

     0   :  { %11 = vsyncpa [#allocation4], 0  ;;  %s725_s0 = inlined_call_operand.hbm [shape: f32[8,8], index: 0, kind: input, shape index: {}]   ;;  %s726_s1 = inlined_call_operand.hbm [shape: f32[8,128], index: 1, kind: input, shape index: {}]   ;;  %s727_s2 = inlined_call_operand.hbm [shape: f32[128,128], index: 2, kind: input, shape index: {}]   ;;  %s728_s3 = inlined_call_operand.vmem [shape: f32[1,128], index: 3, kind: input, shape index: {}]   ;;  %s729_s4 = inlined_call_operand.hbm [shape: f32[128,128], index: 4, kind: input, shape index: {}]   ;;  %s730_s5 = inlined_call_operand.vmem [shape: f32[1,128], index: 5, kind: input, shape index: {}]   ;;  %s731_s6 = inlined_call_operand.hbm [shape: f32[8,128], index: 6, kind: output, shape index: {}]  }
   0x1   :  { %12 = vsyncpa [#allocation7], 0 }
   0x2   :  { %13 = vsyncpa [#allocation10], 0 }
   0x3   :  { %14 = vsyncpa [#allocation5], 0  ;;  %s595_s21 = smov [#allocation6]   ;;  %s596_s23 = smov [#allocation3]  }
   0x4   :  { %s31_s22 = sshll.u32 %s595_s21, 4  ;;  %s21_s24 = sshll.u32 %s596_s23, 4  ;;  %s32_s22 = int_to_ptr.vmem [resolvable:$true] %s31_s22  ;;  %s22_s24 = int_to_ptr.vmem [resolvable:$true] %s21_s24 }
   0x5   :  { %s477_s27 = scalar_lea.hbm %s726_s1, 128 }
   0x6   :  { %p478_p0 = scmp.ne.s32.totalorder %s726_s1, %s477_s27  ;;  %p481_p1 = scmp.lt.u32.totalorder %s477_s27, %s726_s1 }
   0x8   :  { %p483_p2 = pnand %p481_p1, %p478_p0 }
   0xa   :  { %486 = shalt.err (!%p483_p2)
}
   0xb   :  { %s487_s8 = scalar_lea.vmem %s32_s22, 128  ;;  %p492_p4 = scmp.lt.s32.totalorder %s32_s22, %s32_s22 }
   0xc   :  { %p488_p3 = scmp.ne.s32.totalorder %s32_s22, %s487_s8  ;;  %p493_p5 = scmp.lt.s32.totalorder %s487_s8, %s487_s8 }
   0xe   :  { %p494_p6 = por %p493_p5, %p492_p4 }
  0x10   :  { %p495_p7 = pnand %p494_p6, %p488_p3 }
  0x12   :  { %498 = shalt.err (!%p495_p7)
}
  0x13   :  { %34 = dma.hbm_to_vmem [thread:$0]  %s726_s1, 128, %s32_s22, [#allocation7]  }
  0x14   :  { %s499_s13 = scalar_lea.hbm %s725_s0, 128 }
  0x15   :  { %p500_p8 = scmp.ne.s32.totalorder %s725_s0, %s499_s13  ;;  %p503_p9 = scmp.lt.u32.totalorder %s499_s13, %s725_s0 }
  0x17   :  { %p505_p10 = pnand %p503_p9, %p500_p8 }
  0x19   :  { %508 = shalt.err (!%p505_p10)
}
  0x1a   :  { %s509_s18 = scalar_lea.vmem %s22_s24, 128  ;;  %p514_p12 = scmp.lt.s32.totalorder %s22_s24, %s22_s24 }
  0x1b   :  { %p510_p11 = scmp.ne.s32.totalorder %s22_s24, %s509_s18  ;;  %p515_p13 = scmp.lt.s32.totalorder %s509_s18, %s509_s18 }
  0x1d   :  { %p516_p0 = por %p515_p13, %p514_p12 }
  0x1f   :  { %p517_p1 = pnand %p516_p0, %p510_p11 }
  0x21   :  { %520 = shalt.err (!%p517_p1)
}
  0x22   :  { %24 = dma.hbm_to_vmem [thread:$0]  %s725_s0, 128, %s22_s24, [#allocation4]  }
  0x23   :  { %s597_s20 = smov [#allocation8]   ;;  %s521_s25 = scalar_lea.hbm %s727_s2, 2048 }
  0x24   :  { %s40_s21 = sshll.u32 %s597_s20, 4  ;;  %p522_p2 = scmp.ne.s32.totalorder %s727_s2, %s521_s25  ;;  %s41_s21 = int_to_ptr.vmem [resolvable:$true] %s40_s21 }
  0x25   :  { %p525_p3 = scmp.lt.u32.totalorder %s521_s25, %s727_s2 }
  0x27   :  { %p527_p4 = pnand %p525_p3, %p522_p2 }
  0x29   :  { %530 = shalt.err (!%p527_p4)
}
  0x2a   :  { %s531_s30 = scalar_lea.vmem %s41_s21, 2048  ;;  %p536_p6 = scmp.lt.s32.totalorder %s41_s21, %s41_s21 }
  0x2b   :  { %p532_p5 = scmp.ne.s32.totalorder %s41_s21, %s531_s30  ;;  %p537_p7 = scmp.lt.s32.totalorder %s531_s30, %s531_s30 }
  0x2d   :  { %p538_p8 = por %p537_p7, %p536_p6 }
  0x2f   :  { %p539_p9 = pnand %p538_p8, %p532_p5 }
  0x31   :  { %542 = shalt.err (!%p539_p9)
}
  0x32   :  { %s598_s0 = smov 128   ;;  %s599_s24 = smov 8  }
  0x33   :  { %46 = dma.hbm_to_vmem [thread:$0]  %s727_s2, 2048, %s41_s21, [#allocation7], %s598_s0, %s598_s0, %s599_s24  }
  0x34   :  { %s600_s9 = smov [#allocation9]   ;;  %s543_s13 = scalar_lea.hbm %s729_s4, 2048 }
  0x35   :  { %s54_s10 = sshll.u32 %s600_s9, 4  ;;  %p544_p10 = scmp.ne.s32.totalorder %s729_s4, %s543_s13  ;;  %s55_s10 = int_to_ptr.vmem [resolvable:$true] %s54_s10 }
  0x36   :  { %p547_p11 = scmp.lt.u32.totalorder %s543_s13, %s729_s4 }
  0x38   :  { %p549_p12 = pnand %p547_p11, %p544_p10 }
  0x3a   :  { %552 = shalt.err (!%p549_p12)
}
  0x3b   :  { %s553_s18 = scalar_lea.vmem %s55_s10, 2048  ;;  %p558_p0 = scmp.lt.s32.totalorder %s55_s10, %s55_s10 }
  0x3c   :  { %p554_p13 = scmp.ne.s32.totalorder %s55_s10, %s553_s18  ;;  %p559_p1 = scmp.lt.s32.totalorder %s553_s18, %s553_s18 }
  0x3e   :  { %p560_p2 = por %p559_p1, %p558_p0 }
  0x40   :  { %p561_p3 = pnand %p560_p2, %p554_p13 }
  0x42   :  { %564 = shalt.err (!%p561_p3)
}
  0x43   :  { %60 = dma.hbm_to_vmem [thread:$0]  %s729_s4, 2048, %s55_s10, [#allocation10], %s598_s0, %s598_s0, %s599_s24  }
  0x44   :  { %587 = dma.done.wait [#allocation4], 128  }
  0x45   :  { %588 = vsyncadd [#allocation4], 4294967168 }
  0x46   :  { %589 = dma.done.wait [#allocation7], 2176  }
  0x47   :  { %590 = vsyncadd [#allocation7], 4294965120 }
  0x48   :  { %591 = dma.done.wait [#allocation10], 2048  }
  0x49   :  { %592 = vsyncadd [#allocation10], 4294965248  ;;  %vm79_vm0 = vcmask 7168   ;;  %v601_v0 = vmov 0.0   ;;  %vm83_vm1 = vcmask 64512   ;;  %v81_v1 = vld [vmem:[#allocation3] sm:$0xff] }
  0x4a   :  { %80 = vst.msk [vmem:[#allocation2] sm:$0xff] %vm79_vm0, %v601_v0  ;;  %v84_v2 = vsel %vm83_vm1, %v81_v1, 0.0  ;;  %v602_v3 = vmov 0   ;;  %v103_v4 = vld [vmem:[#allocation8] sm:$0xff]  ;;  %v104_v5 = vld [vmem:[#allocation8 + $0x8] sm:$0xff]  ;;  %v105_v6 = vld [vmem:[#allocation8 + $0x10] sm:$0xff] }
  0x4b   :  { %85 = vadd.xlane.f32.xlu0 %v84_v2  ;;  %v603_v7 = vmov 0.0|0.0   ;;  %v416_v8 = vpack.c.bf16 %v104_v5, %v103_v4  ;;  %v106_v9 = vld [vmem:[#allocation8 + $0x18] sm:$0xff]  ;;  %v107_v11 = vld [vmem:[#allocation8 + $0x20] sm:$0xff]  ;;  %v108_v12 = vld [vmem:[#allocation8 + $0x28] sm:$0xff]  ;;  %vm604_vm2 = vmmov 0   ;;  %s605_s22 = smov [#allocation11]  }
  0x4c   :  { %474 = vset.pattern.permute.xlu0 %v602_v3  ;;  %415 = vmatprep.subr.bf16.mxu0 %v603_v7  ;;  %v419_v10 = vpack.c.bf16 %v106_v9, %v105_v6  ;;  %v422_v13 = vpack.c.bf16 %v108_v12, %v107_v11  ;;  %v109_v14 = vld [vmem:[#allocation8 + $0x30] sm:$0xff]  ;;  %v110_v15 = vld [vmem:[#allocation8 + $0x38] sm:$0xff]  ;;  %v111_v17 = vld [vmem:[#allocation8 + $0x40] sm:$0xff]  ;;  %s298_s23 = sshll.u32 %s605_s22, 4  ;;  %s299_s23 = int_to_ptr.vmem [resolvable:$true] %s298_s23 }
  0x4d   :  { %439 = vmatprep.subr.bf16.mxu1 %v603_v7  ;;  %417 = vmatpush3.bf16.msra.mxu0 %v416_v8  ;;  %v425_v16 = vpack.c.bf16 %v110_v15, %v109_v14  ;;  %v112_v18 = vld [vmem:[#allocation8 + $0x48] sm:$0xff]  ;;  %v113_v20 = vld [vmem:[#allocation8 + $0x50] sm:$0xff]  ;;  %v114_v21 = vld [vmem:[#allocation8 + $0x58] sm:$0xff]  ;;  %s565_s25 = scalar_lea.vmem %s299_s23, 128  ;;  %p570_p5 = scmp.lt.s32.totalorder %s299_s23, %s299_s23 }
  0x4e   :  { %418 = vmatprep.subr.bf16.mxu0 %v603_v7  ;;  %v428_v19 = vpack.c.bf16 %v112_v18, %v111_v17  ;;  %v431_v22 = vpack.c.bf16 %v114_v21, %v113_v20  ;;  %v115_v23 = vld [vmem:[#allocation8 + $0x60] sm:$0xff]  ;;  %v116_v24 = vld [vmem:[#allocation8 + $0x68] sm:$0xff]  ;;  %v117_v26 = vld [vmem:[#allocation8 + $0x70] sm:$0xff]  ;;  %377 = vmatprep.mubr.msk.f32.mxu0 %vm604_vm2, %v601_v0  ;;  %p566_p4 = scmp.ne.s32.totalorder %s299_s23, %s565_s25  ;;  %p571_p6 = scmp.lt.s32.totalorder %s565_s25, %s565_s25 }
  0x4f   :  { %v434_v25 = vpack.c.bf16 %v116_v24, %v115_v23  ;;  %v118_v27 = vld [vmem:[#allocation8 + $0x78] sm:$0xff]  ;;  %412 = vmatprep.mubr.msk.f32.mxu1 %vm604_vm2, %v601_v0  ;;  %v198_v35 = vld [vmem:[#allocation9] sm:$0xff]  ;;  %v199_v36 = vld [vmem:[#allocation9 + $0x8] sm:$0xff] }
  0x50   :  { %v437_v28 = vpack.c.bf16 %v118_v27, %v117_v26  ;;  %v200_v37 = vld [vmem:[#allocation9 + $0x10] sm:$0xff]  ;;  %v440_v38 = vpack.c.bf16 %v199_v36, %v198_v35  ;;  %v201_v39 = vld [vmem:[#allocation9 + $0x18] sm:$0xff]  ;;  %v202_v41 = vld [vmem:[#allocation9 + $0x20] sm:$0xff]  ;;  %p572_p7 = por %p571_p6, %p570_p5 }
  0x51   :  { %420 = vmatpush3.bf16.msra.mxu0 %v419_v10  ;;  %v82_v29 = vld [vmem:[#allocation2] sm:$0xff]  ;;  %v443_v40 = vpack.c.bf16 %v201_v39, %v200_v37  ;;  %v204_v44 = vld [vmem:[#allocation9 + $0x30] sm:$0xff]  ;;  %v205_v45 = vld [vmem:[#allocation9 + $0x38] sm:$0xff] }
  0x52   :  { %421 = vmatprep.subr.bf16.mxu0 %v603_v7  ;;  %441 = vmatpush3.bf16.msra.mxu1 %v440_v38  ;;  %v203_v42 = vld [vmem:[#allocation9 + $0x28] sm:$0xff]  ;;  %v449_v46 = vpack.c.bf16 %v205_v45, %v204_v44  ;;  %v206_v47 = vld [vmem:[#allocation9 + $0x40] sm:$0xff]  ;;  %v208_v50 = vld [vmem:[#allocation9 + $0x50] sm:$0xff]  ;;  %p573_p8 = pnand %p572_p7, %p566_p4 }
  0x53   :  { %442 = vmatprep.subr.bf16.mxu1 %v603_v7  ;;  %v446_v43 = vpack.c.bf16 %v203_v42, %v202_v41  ;;  %v207_v48 = vld [vmem:[#allocation9 + $0x48] sm:$0xff]  ;;  %v209_v51 = vld [vmem:[#allocation9 + $0x58] sm:$0xff]  ;;  %v210_v56 = vld [vmem:[#allocation9 + $0x60] sm:$0xff] }
  0x54   :  { %v452_v49 = vpack.c.bf16 %v207_v48, %v206_v47  ;;  %v455_v52 = vpack.c.bf16 %v209_v51, %v208_v50  ;;  %v96_v53 = vld [vmem:[#allocation6] sm:$0xff]  ;;  %v211_v57 = vld [vmem:[#allocation9 + $0x68] sm:$0xff]  ;;  %v212_v59 = vld [vmem:[#allocation9 + $0x70] sm:$0xff] }
  0x55   :  { %423 = vmatpush3.bf16.msra.mxu0 %v422_v13  ;;  %v458_v58 = vpack.c.bf16 %v211_v57, %v210_v56  ;;  %v213_v60 = vld [vmem:[#allocation9 + $0x78] sm:$0xff]  ;;  %v309_v62 = vld [vmem:[%s728_s3] ss:$0 sm:$0xff] }
  0x56   :  { %424 = vmatprep.subr.bf16.mxu0 %v603_v7  ;;  %444 = vmatpush3.bf16.msra.mxu1 %v443_v40  ;;  %v461_v61 = vpack.c.bf16 %v213_v60, %v212_v59  ;;  %v310_v4 = vld [vmem:[%s730_s5] ss:$0 sm:$0xff] }
  0x57   :  { %445 = vmatprep.subr.bf16.mxu1 %v603_v7 }
  0x59   :  { %426 = vmatpush3.bf16.msra.mxu0 %v425_v16 }
  0x5a   :  { %427 = vmatprep.subr.bf16.mxu0 %v603_v7  ;;  %447 = vmatpush3.bf16.msra.mxu1 %v446_v43 }
  0x5b   :  { %448 = vmatprep.subr.bf16.mxu1 %v603_v7 }
  0x5d   :  { %429 = vmatpush3.bf16.msra.mxu0 %v428_v19 }
  0x5e   :  { %430 = vmatprep.subr.bf16.mxu0 %v603_v7  ;;  %450 = vmatpush3.bf16.msra.mxu1 %v449_v46 }
  0x5f   :  { %451 = vmatprep.subr.bf16.mxu1 %v603_v7 }
  0x61   :  { %432 = vmatpush3.bf16.msra.mxu0 %v431_v22 }
  0x62   :  { %433 = vmatprep.subr.bf16.mxu0 %v603_v7  ;;  %453 = vmatpush3.bf16.msra.mxu1 %v452_v49 }
  0x63   :  { %454 = vmatprep.subr.bf16.mxu1 %v603_v7 }
  0x65   :  { %435 = vmatpush3.bf16.msra.mxu0 %v434_v25 }
  0x66   :  { %436 = vmatprep.subr.bf16.mxu0 %v603_v7  ;;  %456 = vmatpush3.bf16.msra.mxu1 %v455_v52 }
  0x67   :  { %457 = vmatprep.subr.bf16.mxu1 %v603_v7 }
  0x69   :  { %438 = vmatpush3.bf16.msra.mxu0 %v437_v28 }
  0x6a   :  { %459 = vmatpush3.bf16.msra.mxu1 %v458_v58 }
  0x6b   :  { %460 = vmatprep.subr.bf16.mxu1 %v603_v7 }
  0x6e   :  { %462 = vmatpush3.bf16.msra.mxu1 %v461_v61 }
  0xd8   :  { %v86_v30 = vpop.xlane.xlu0 %85 }
  0xd9   :  { %v87_v31 = vadd.f32 %v86_v30, %v82_v29 }
  0xdb   :  { %89 = vst.msk [vmem:[#allocation2] sm:$0xff] %vm79_vm0, %v87_v31 }
  0xe2   :  { %v93_v32 = vld [vmem:[#allocation2] sm:$0xff] }
  0xe3   :  { %v94_v33 = vadd.f32 1.0, %v93_v32 }
  0xe5   :  { %475 = vrsqrt.f32 %v94_v33 }
  0xef   :  { %v476_v34 = vpop.eup %475 }
  0xf0   :  { %99 = vperm.xlu0 %474, %v476_v34  }
 0x16f   :  { %v100_v54 = vpop.permute.xlu0 %99 }
 0x170   :  { %v102_v55 = vmul.f32 %v100_v54, %v96_v53 }
 0x172   :  { %378 = vmatmul.mubr.f32.vlgmr.msra.gmra.mrb[0].mxu0 %v102_v55 }
 0x245   :  { %v192_v63 = vpop.f32.mrb[0].mxu0 }
 0x246   :  { %v193_v0 = vadd.f32 %v309_v62, %v192_v63  ;;  %v379_v1 = vpop.f32.mrb[1].mxu0 }
 0x248   :  { %v196_v2 = vmax.f32 %v193_v0, 0.0 }
 0x24a   :  { %v197_v3 = vmul.f32 %v196_v2, %v100_v54 }
 0x24c   :  { %413 = vmatmul.mubr.f32.vlgmr.msra.gmra.mrb[0].mxu1 %v197_v3 }
 0x31f   :  { %v287_v5 = vpop.f32.mrb[0].mxu1 }
 0x320   :  { %v288_v6 = vadd.f32 %v310_v4, %v287_v5  ;;  %v414_v7 = vpop.f32.mrb[1].mxu1 }
 0x322   :  { %291 = vst [vmem:[#allocation11] sm:$0xff] %v288_v6 }
 0x323   :  { %576 = shalt.err (!%p573_p8)
}
 0x324   :  { %s577_s27 = scalar_lea.hbm %s731_s6, 128 }
 0x325   :  { %p578_p9 = scmp.ne.s32.totalorder %s731_s6, %s577_s27  ;;  %p581_p10 = scmp.lt.u32.totalorder %s577_s27, %s731_s6 }
 0x327   :  { %p583_p11 = pnand %p581_p10, %p578_p9 }
 0x329   :  { %586 = shalt.err (!%p583_p11)
}
 0x32a   :  { %301 = dma.vmem_to_hbm [thread:$0]  %s299_s23, 128, %s731_s6, [#allocation5]  }
 0x32b   :  { %593 = dma.done.wait [#allocation5], 128  }
 0x32c   :  { %594 = vsyncadd [#allocation5], 4294967168 }
 0x32d   :  { %305 = vsyncpa [#allocation4], 1 }
 0x32e   :  { %306 = vsyncpa [#allocation7], 1 }
 0x32f   :  { %307 = vsyncpa [#allocation10], 1 }
 0x330   :  { %308 = vsyncpa [#allocation5], 1 }

// kernel: tpu_custom_call.1
= control target key start
LH: loop header
LB: loop body
LE: loop exit
PB: predicated region body
PF: predicated region fallthrough
CT: control target
= control target key end

     0   :  { %11 = vsyncpa [#allocation4], 0  ;;  %s725_s0 = inlined_call_operand.hbm [shape: f32[8,8], index: 0, kind: input, shape index: {}]   ;;  %s726_s1 = inlined_call_operand.hbm [shape: f32[8,128], index: 1, kind: input, shape index: {}]   ;;  %s727_s2 = inlined_call_operand.hbm [shape: f32[128,128], index: 2, kind: input, shape index: {}]   ;;  %s728_s3 = inlined_call_operand.vmem [shape: f32[1,128], index: 3, kind: input, shape index: {}]   ;;  %s729_s4 = inlined_call_operand.hbm [shape: f32[128,128], index: 4, kind: input, shape index: {}]   ;;  %s730_s5 = inlined_call_operand.vmem [shape: f32[1,128], index: 5, kind: input, shape index: {}]   ;;  %s731_s6 = inlined_call_operand.hbm [shape: f32[8,128], index: 6, kind: output, shape index: {}]  }
   0x1   :  { %12 = vsyncpa [#allocation7], 0 }
   0x2   :  { %13 = vsyncpa [#allocation10], 0 }
   0x3   :  { %14 = vsyncpa [#allocation5], 0  ;;  %s595_s21 = smov [#allocation6]   ;;  %s596_s23 = smov [#allocation3]  }
   0x4   :  { %s31_s22 = sshll.u32 %s595_s21, 4  ;;  %s21_s24 = sshll.u32 %s596_s23, 4  ;;  %s32_s22 = int_to_ptr.vmem [resolvable:$true] %s31_s22  ;;  %s22_s24 = int_to_ptr.vmem [resolvable:$true] %s21_s24 }
   0x5   :  { %s477_s27 = scalar_lea.hbm %s726_s1, 128 }
   0x6   :  { %p478_p0 = scmp.ne.s32.totalorder %s726_s1, %s477_s27  ;;  %p481_p1 = scmp.lt.u32.totalorder %s477_s27, %s726_s1 }
   0x8   :  { %p483_p2 = pnand %p481_p1, %p478_p0 }
   0xa   :  { %486 = shalt.err (!%p483_p2)
}
   0xb   :  { %s487_s8 = scalar_lea.vmem %s32_s22, 128  ;;  %p492_p4 = scmp.lt.s32.totalorder %s32_s22, %s32_s22 }
   0xc   :  { %p488_p3 = scmp.ne.s32.totalorder %s32_s22, %s487_s8  ;;  %p493_p5 = scmp.lt.s32.totalorder %s487_s8, %s487_s8 }
   0xe   :  { %p494_p6 = por %p493_p5, %p492_p4 }
  0x10   :  { %p495_p7 = pnand %p494_p6, %p488_p3 }
  0x12   :  { %498 = shalt.err (!%p495_p7)
}
  0x13   :  { %34 = dma.hbm_to_vmem [thread:$0]  %s726_s1, 128, %s32_s22, [#allocation7]  }
  0x14   :  { %s499_s13 = scalar_lea.hbm %s725_s0, 128 }
  0x15   :  { %p500_p8 = scmp.ne.s32.totalorder %s725_s0, %s499_s13  ;;  %p503_p9 = scmp.lt.u32.totalorder %s499_s13, %s725_s0 }
  0x17   :  { %p505_p10 = pnand %p503_p9, %p500_p8 }
  0x19   :  { %508 = shalt.err (!%p505_p10)
}
  0x1a   :  { %s509_s18 = scalar_lea.vmem %s22_s24, 128  ;;  %p514_p12 = scmp.lt.s32.totalorder %s22_s24, %s22_s24 }
  0x1b   :  { %p510_p11 = scmp.ne.s32.totalorder %s22_s24, %s509_s18  ;;  %p515_p13 = scmp.lt.s32.totalorder %s509_s18, %s509_s18 }
  0x1d   :  { %p516_p0 = por %p515_p13, %p514_p12 }
  0x1f   :  { %p517_p1 = pnand %p516_p0, %p510_p11 }
  0x21   :  { %520 = shalt.err (!%p517_p1)
}
  0x22   :  { %24 = dma.hbm_to_vmem [thread:$0]  %s725_s0, 128, %s22_s24, [#allocation4]  }
  0x23   :  { %s597_s20 = smov [#allocation8]   ;;  %s521_s25 = scalar_lea.hbm %s727_s2, 2048 }
  0x24   :  { %s40_s21 = sshll.u32 %s597_s20, 4  ;;  %p522_p2 = scmp.ne.s32.totalorder %s727_s2, %s521_s25  ;;  %s41_s21 = int_to_ptr.vmem [resolvable:$true] %s40_s21 }
  0x25   :  { %p525_p3 = scmp.lt.u32.totalorder %s521_s25, %s727_s2 }
  0x27   :  { %p527_p4 = pnand %p525_p3, %p522_p2 }
  0x29   :  { %530 = shalt.err (!%p527_p4)
}
  0x2a   :  { %s531_s30 = scalar_lea.vmem %s41_s21, 2048  ;;  %p536_p6 = scmp.lt.s32.totalorder %s41_s21, %s41_s21 }
  0x2b   :  { %p532_p5 = scmp.ne.s32.totalorder %s41_s21, %s531_s30  ;;  %p537_p7 = scmp.lt.s32.totalorder %s531_s30, %s531_s30 }
  0x2d   :  { %p538_p8 = por %p537_p7, %p536_p6 }
  0x2f   :  { %p539_p9 = pnand %p538_p8, %p532_p5 }
  0x31   :  { %542 = shalt.err (!%p539_p9)
}
  0x32   :  { %s598_s0 = smov 128   ;;  %s599_s24 = smov 8  }
  0x33   :  { %46 = dma.hbm_to_vmem [thread:$0]  %s727_s2, 2048, %s41_s21, [#allocation7], %s598_s0, %s598_s0, %s599_s24  }
  0x34   :  { %s600_s9 = smov [#allocation9]   ;;  %s543_s13 = scalar_lea.hbm %s729_s4, 2048 }
  0x35   :  { %s54_s10 = sshll.u32 %s600_s9, 4  ;;  %p544_p10 = scmp.ne.s32.totalorder %s729_s4, %s543_s13  ;;  %s55_s10 = int_to_ptr.vmem [resolvable:$true] %s54_s10 }
  0x36   :  { %p547_p11 = scmp.lt.u32.totalorder %s543_s13, %s729_s4 }
  0x38   :  { %p549_p12 = pnand %p547_p11, %p544_p10 }
  0x3a   :  { %552 = shalt.err (!%p549_p12)
}
  0x3b   :  { %s553_s18 = scalar_lea.vmem %s55_s10, 2048  ;;  %p558_p0 = scmp.lt.s32.totalorder %s55_s10, %s55_s10 }
  0x3c   :  { %p554_p13 = scmp.ne.s32.totalorder %s55_s10, %s553_s18  ;;  %p559_p1 = scmp.lt.s32.totalorder %s553_s18, %s553_s18 }
  0x3e   :  { %p560_p2 = por %p559_p1, %p558_p0 }
  0x40   :  { %p561_p3 = pnand %p560_p2, %p554_p13 }
  0x42   :  { %564 = shalt.err (!%p561_p3)
}
  0x43   :  { %60 = dma.hbm_to_vmem [thread:$0]  %s729_s4, 2048, %s55_s10, [#allocation10], %s598_s0, %s598_s0, %s599_s24  }
  0x44   :  { %587 = dma.done.wait [#allocation4], 128  }
  0x45   :  { %588 = vsyncadd [#allocation4], 4294967168 }
  0x46   :  { %589 = dma.done.wait [#allocation7], 2176  }
  0x47   :  { %590 = vsyncadd [#allocation7], 4294965120 }
  0x48   :  { %591 = dma.done.wait [#allocation10], 2048  }
  0x49   :  { %592 = vsyncadd [#allocation10], 4294965248  ;;  %vm79_vm0 = vcmask 7168   ;;  %v601_v0 = vmov 0.0   ;;  %vm83_vm1 = vcmask 64512   ;;  %v81_v1 = vld [vmem:[#allocation3] sm:$0xff] }
  0x4a   :  { %80 = vst.msk [vmem:[#allocation2] sm:$0xff] %vm79_vm0, %v601_v0  ;;  %v84_v2 = vsel %vm83_vm1, %v81_v1, 0.0  ;;  %v602_v3 = vmov 0   ;;  %v103_v4 = vld [vmem:[#allocation8] sm:$0xff]  ;;  %v104_v5 = vld [vmem:[#allocation8 + $0x8] sm:$0xff]  ;;  %v105_v6 = vld [vmem:[#allocation8 + $0x10] sm:$0xff] }
  0x4b   :  { %85 = vadd.xlane.f32.xlu0 %v84_v2  ;;  %v603_v7 = vmov 0.0|0.0   ;;  %v416_v8 = vpack.c.bf16 %v104_v5, %v103_v4  ;;  %v106_v9 = vld [vmem:[#allocation8 + $0x18] sm:$0xff]  ;;  %v107_v11 = vld [vmem:[#allocation8 + $0x20] sm:$0xff]  ;;  %v108_v12 = vld [vmem:[#allocation8 + $0x28] sm:$0xff]  ;;  %vm604_vm2 = vmmov 0   ;;  %s605_s22 = smov [#allocation11]  }
  0x4c   :  { %474 = vset.pattern.permute.xlu0 %v602_v3  ;;  %415 = vmatprep.subr.bf16.mxu0 %v603_v7  ;;  %v419_v10 = vpack.c.bf16 %v106_v9, %v105_v6  ;;  %v422_v13 = vpack.c.bf16 %v108_v12, %v107_v11  ;;  %v109_v14 = vld [vmem:[#allocation8 + $0x30] sm:$0xff]  ;;  %v110_v15 = vld [vmem:[#allocation8 + $0x38] sm:$0xff]  ;;  %v111_v17 = vld [vmem:[#allocation8 + $0x40] sm:$0xff]  ;;  %s298_s23 = sshll.u32 %s605_s22, 4  ;;  %s299_s23 = int_to_ptr.vmem [resolvable:$true] %s298_s23 }
  0x4d   :  { %439 = vmatprep.subr.bf16.mxu1 %v603_v7  ;;  %417 = vmatpush3.bf16.msra.mxu0 %v416_v8  ;;  %v425_v16 = vpack.c.bf16 %v110_v15, %v109_v14  ;;  %v112_v18 = vld [vmem:[#allocation8 + $0x48] sm:$0xff]  ;;  %v113_v20 = vld [vmem:[#allocation8 + $0x50] sm:$0xff]  ;;  %v114_v21 = vld [vmem:[#allocation8 + $0x58] sm:$0xff]  ;;  %s565_s25 = scalar_lea.vmem %s299_s23, 128  ;;  %p570_p5 = scmp.lt.s32.totalorder %s299_s23, %s299_s23 }
  0x4e   :  { %418 = vmatprep.subr.bf16.mxu0 %v603_v7  ;;  %v428_v19 = vpack.c.bf16 %v112_v18, %v111_v17  ;;  %v431_v22 = vpack.c.bf16 %v114_v21, %v113_v20  ;;  %v115_v23 = vld [vmem:[#allocation8 + $0x60] sm:$0xff]  ;;  %v116_v24 = vld [vmem:[#allocation8 + $0x68] sm:$0xff]  ;;  %v117_v26 = vld [vmem:[#allocation8 + $0x70] sm:$0xff]  ;;  %377 = vmatprep.mubr.msk.f32.mxu0 %vm604_vm2, %v601_v0  ;;  %p566_p4 = scmp.ne.s32.totalorder %s299_s23, %s565_s25  ;;  %p571_p6 = scmp.lt.s32.totalorder %s565_s25, %s565_s25 }
  0x4f   :  { %v434_v25 = vpack.c.bf16 %v116_v24, %v115_v23  ;;  %v118_v27 = vld [vmem:[#allocation8 + $0x78] sm:$0xff]  ;;  %412 = vmatprep.mubr.msk.f32.mxu1 %vm604_vm2, %v601_v0  ;;  %v198_v35 = vld [vmem:[#allocation9] sm:$0xff]  ;;  %v199_v36 = vld [vmem:[#allocation9 + $0x8] sm:$0xff] }
  0x50   :  { %v437_v28 = vpack.c.bf16 %v118_v27, %v117_v26  ;;  %v200_v37 = vld [vmem:[#allocation9 + $0x10] sm:$0xff]  ;;  %v440_v38 = vpack.c.bf16 %v199_v36, %v198_v35  ;;  %v201_v39 = vld [vmem:[#allocation9 + $0x18] sm:$0xff]  ;;  %v202_v41 = vld [vmem:[#allocation9 + $0x20] sm:$0xff]  ;;  %p572_p7 = por %p571_p6, %p570_p5 }
  0x51   :  { %420 = vmatpush3.bf16.msra.mxu0 %v419_v10  ;;  %v82_v29 = vld [vmem:[#allocation2] sm:$0xff]  ;;  %v443_v40 = vpack.c.bf16 %v201_v39, %v200_v37  ;;  %v204_v44 = vld [vmem:[#allocation9 + $0x30] sm:$0xff]  ;;  %v205_v45 = vld [vmem:[#allocation9 + $0x38] sm:$0xff] }
  0x52   :  { %421 = vmatprep.subr.bf16.mxu0 %v603_v7  ;;  %441 = vmatpush3.bf16.msra.mxu1 %v440_v38  ;;  %v203_v42 = vld [vmem:[#allocation9 + $0x28] sm:$0xff]  ;;  %v449_v46 = vpack.c.bf16 %v205_v45, %v204_v44  ;;  %v206_v47 = vld [vmem:[#allocation9 + $0x40] sm:$0xff]  ;;  %v208_v50 = vld [vmem:[#allocation9 + $0x50] sm:$0xff]  ;;  %p573_p8 = pnand %p572_p7, %p566_p4 }
  0x53   :  { %442 = vmatprep.subr.bf16.mxu1 %v603_v7  ;;  %v446_v43 = vpack.c.bf16 %v203_v42, %v202_v41  ;;  %v207_v48 = vld [vmem:[#allocation9 + $0x48] sm:$0xff]  ;;  %v209_v51 = vld [vmem:[#allocation9 + $0x58] sm:$0xff]  ;;  %v210_v56 = vld [vmem:[#allocation9 + $0x60] sm:$0xff] }
  0x54   :  { %v452_v49 = vpack.c.bf16 %v207_v48, %v206_v47  ;;  %v455_v52 = vpack.c.bf16 %v209_v51, %v208_v50  ;;  %v96_v53 = vld [vmem:[#allocation6] sm:$0xff]  ;;  %v211_v57 = vld [vmem:[#allocation9 + $0x68] sm:$0xff]  ;;  %v212_v59 = vld [vmem:[#allocation9 + $0x70] sm:$0xff] }
  0x55   :  { %423 = vmatpush3.bf16.msra.mxu0 %v422_v13  ;;  %v458_v58 = vpack.c.bf16 %v211_v57, %v210_v56  ;;  %v213_v60 = vld [vmem:[#allocation9 + $0x78] sm:$0xff]  ;;  %v309_v62 = vld [vmem:[%s728_s3] ss:$0 sm:$0xff] }
  0x56   :  { %424 = vmatprep.subr.bf16.mxu0 %v603_v7  ;;  %444 = vmatpush3.bf16.msra.mxu1 %v443_v40  ;;  %v461_v61 = vpack.c.bf16 %v213_v60, %v212_v59  ;;  %v310_v4 = vld [vmem:[%s730_s5] ss:$0 sm:$0xff] }
  0x57   :  { %445 = vmatprep.subr.bf16.mxu1 %v603_v7 }
  0x59   :  { %426 = vmatpush3.bf16.msra.mxu0 %v425_v16 }
  0x5a   :  { %427 = vmatprep.subr.bf16.mxu0 %v603_v7  ;;  %447 = vmatpush3.bf16.msra.mxu1 %v446_v43 }
  0x5b   :  { %448 = vmatprep.subr.bf16.mxu1 %v603_v7 }
  0x5d   :  { %429 = vmatpush3.bf16.msra.mxu0 %v428_v19 }
  0x5e   :  { %430 = vmatprep.subr.bf16.mxu0 %v603_v7  ;;  %450 = vmatpush3.bf16.msra.mxu1 %v449_v46 }
  0x5f   :  { %451 = vmatprep.subr.bf16.mxu1 %v603_v7 }
  0x61   :  { %432 = vmatpush3.bf16.msra.mxu0 %v431_v22 }
  0x62   :  { %433 = vmatprep.subr.bf16.mxu0 %v603_v7  ;;  %453 = vmatpush3.bf16.msra.mxu1 %v452_v49 }
  0x63   :  { %454 = vmatprep.subr.bf16.mxu1 %v603_v7 }
  0x65   :  { %435 = vmatpush3.bf16.msra.mxu0 %v434_v25 }
  0x66   :  { %436 = vmatprep.subr.bf16.mxu0 %v603_v7  ;;  %456 = vmatpush3.bf16.msra.mxu1 %v455_v52 }
  0x67   :  { %457 = vmatprep.subr.bf16.mxu1 %v603_v7 }
  0x69   :  { %438 = vmatpush3.bf16.msra.mxu0 %v437_v28 }
  0x6a   :  { %459 = vmatpush3.bf16.msra.mxu1 %v458_v58 }
  0x6b   :  { %460 = vmatprep.subr.bf16.mxu1 %v603_v7 }
  0x6e   :  { %462 = vmatpush3.bf16.msra.mxu1 %v461_v61 }
  0xd8   :  { %v86_v30 = vpop.xlane.xlu0 %85 }
  0xd9   :  { %v87_v31 = vadd.f32 %v86_v30, %v82_v29 }
  0xdb   :  { %89 = vst.msk [vmem:[#allocation2] sm:$0xff] %vm79_vm0, %v87_v31 }
  0xe2   :  { %v93_v32 = vld [vmem:[#allocation2] sm:$0xff] }
  0xe3   :  { %v94_v33 = vadd.f32 1.0, %v93_v32 }
  0xe5   :  { %475 = vrsqrt.f32 %v94_v33 }
  0xef   :  { %v476_v34 = vpop.eup %475 }
  0xf0   :  { %99 = vperm.xlu0 %474, %v476_v34  }
 0x16f   :  { %v100_v54 = vpop.permute.xlu0 %99 }
 0x170   :  { %v102_v55 = vmul.f32 %v100_v54, %v96_v53 }
 0x172   :  { %378 = vmatmul.mubr.f32.vlgmr.msra.gmra.mrb[0].mxu0 %v102_v55 }
 0x245   :  { %v192_v63 = vpop.f32.mrb[0].mxu0 }
 0x246   :  { %v193_v0 = vadd.f32 %v309_v62, %v192_v63  ;;  %v379_v1 = vpop.f32.mrb[1].mxu0 }
 0x248   :  { %v196_v2 = vmax.f32 %v193_v0, 0.0 }
 0x24a   :  { %v197_v3 = vmul.f32 %v196_v2, %v100_v54 }
 0x24c   :  { %413 = vmatmul.mubr.f32.vlgmr.msra.gmra.mrb[0].mxu1 %v197_v3 }
 0x31f   :  { %v287_v5 = vpop.f32.mrb[0].mxu1 }
 0x320   :  { %v288_v6 = vadd.f32 %v310_v4, %v287_v5  ;;  %v414_v7 = vpop.f32.mrb[1].mxu1 }
 0x322   :  { %291 = vst [vmem:[#allocation11] sm:$0xff] %v288_v6 }
 0x323   :  { %576 = shalt.err (!%p573_p8)
}
 0x324   :  { %s577_s27 = scalar_lea.hbm %s731_s6, 128 }
 0x325   :  { %p578_p9 = scmp.ne.s32.totalorder %s731_s6, %s577_s27  ;;  %p581_p10 = scmp.lt.u32.totalorder %s577_s27, %s731_s6 }
 0x327   :  { %p583_p11 = pnand %p581_p10, %p578_p9 }
 0x329   :  { %586 = shalt.err (!%p583_p11)
}
 0x32a   :  { %301 = dma.vmem_to_hbm [thread:$0]  %s299_s23, 128, %s731_s6, [#allocation5]  }
 0x32b   :  { %593 = dma.done.wait [#allocation5], 128  }
 0x32c   :  { %594 = vsyncadd [#allocation5], 4294967168 }
 0x32d   :  { %305 = vsyncpa [#allocation4], 1 }
 0x32e   :  { %306 = vsyncpa [#allocation7], 1 }
 0x32f   :  { %307 = vsyncpa [#allocation10], 1 }
 0x330   :  { %308 = vsyncpa [#allocation5], 1 }

</bundles_post_ra>
